<compile_context>
chip_gen: v7x
topology: tpu7x:2x2x1
jax: 0.10.0
libtpu: 0.0.40
codegen_flags: <defaults>
</compile_context>

<pallas_src>
import functools
import math

import jax
import jax.numpy as jnp
from jax.experimental import pallas as pl
from jax.experimental.pallas import tpu as pltpu

_LOG_2PI = math.log(2.0 * math.pi)
_MIB = 1024 * 1024


# --------------------------------------------------------------------------
# VMEM budgeting (padding-aware, generation-aware)
# --------------------------------------------------------------------------
def _round_up(v, m):
    return ((v + m - 1) // m) * m


def _vmem_capacity_bytes():
    """Physical VMEM of the current generation; conservative fallback."""
    try:
        cap = int(pltpu.get_tpu_info().vmem_capacity_bytes)
        if cap > 0:
            return cap
    except Exception:
        pass
    return 64 * _MIB                      # safe floor (v7x-sized) on any backend


def _vmem_budgets():
    """(double-buffered working-set budget, vmem_limit_bytes) for this chip."""
    cap = _vmem_capacity_bytes()
    if cap >= 100 * _MIB:                 # v5e / v6e: 128 MiB -> big tiles are free
        return 56 * _MIB, 100 * _MIB
    # v7x-class (64 MiB physical): leave headroom for compiler internal scratch.
    return 40 * _MIB, min(48 * _MIB, max(cap - 12 * _MIB, 32 * _MIB))


def _working_set_bytes(tile_m, d, kp2):
    """Padding-aware, double-buffered VMEM footprint of one (q, m-tile) block set.

    Every VMEM buffer pads its last dim to a multiple of 128 lanes and its
    second-to-last dim to a multiple of 8 sublanes (16 for bf16)."""
    lanes_kp2 = _round_up(kp2, 128)
    lanes_d = _round_up(d, 128)
    rows32 = _round_up(max(tile_m, 1), 8)
    rows16 = _round_up(max(tile_m, 1), 16)

    per_set = 0
    per_set += rows32 * lanes_kp2 * 4                      # cond_wt (mu)     f32
    per_set += rows32 * lanes_kp2 * 4                      # optm_wt (x)      f32
    per_set += rows16 * lanes_kp2 * 2                      # stroke mask      bf16
    per_set += rows32 * 128 * 4                            # aff+1/den (8->128) f32
    per_set += rows16 * lanes_d * 2                        # recons           bf16
    per_set += rows32 * lanes_kp2 * 4                      # trans out        f32
    per_set += 8 * _round_up(max(tile_m, 1), 128) * 4      # score out (lane-dense)
    per_set += 8 * lanes_d * 4                             # qry (reused, still buffered)
    return 2 * per_set                                     # double-buffered pipeline


def _pick_tile_m(m, d, kp2, budget_bytes):
    """Rows (of the ss*ps axis) per block: whole-M when it fits the padded,
    double-buffered budget, else the largest 128-aligned divisor of M."""
    if _working_set_bytes(m, d, kp2) <= budget_bytes:
        return m
    t = (m // 128) * 128
    while t >= 128:
        if m % t == 0 and _working_set_bytes(t, d, kp2) <= budget_bytes:
            return t
        t -= 128
    # TODO(synk): for very large ss*ps*D, tile the pixel axis D with a VMEM
    # accumulator (pl.when init/finalize) instead of a whole-M fallback.
    return m


# --------------------------------------------------------------------------
# Fused kernel: token score + affine transform + image score
# --------------------------------------------------------------------------
def fused_classify_kernel(mu_ref, x_ref, mask_ref, aff_ref, recon_ref, qry_ref,
                          score_ref, trans_ref, *,
                          inv_std, norm_const, inv_scale, img_const, kp2):
    """One (q, m-tile) block.

    Block shapes (leading grid dim of 1 squeezed by indexing [0]):
      mu, x, trans : [TILE_M, K*P*2]  f32   (x/y interleaved on the lane axis)
      mask         : [TILE_M, K*P*2]  bf16  ({0,1} stroke on/off, exact)
      aff          : [TILE_M, 8]      f32   (lanes 0..6 raw affines, lane 7 = 1/den)
      recon        : [TILE_M, D]      bf16
      qry          : [1, D]           f32   (one query image, broadcast over rows)
      score        : [1, TILE_M]      f32   (lane-dense log_score)
    """
    assert kp2 % 2 == 0 and kp2 >= 2, "lane layout must be [x0,y0,x1,y1,...]"

    mu = mu_ref[0]
    x = x_ref[0]
    mask = mask_ref[0].astype(jnp.float32)        # {0,1}: exact in bf16
    aff = aff_ref[0]

    # ---- token score: Independent(Normal(mu, std), 2).log_prob(optm_wt),
    # stroke-weighted mean.  1/std and -(log std + 0.5 log 2pi) are hoisted;
    # the per-lane weight mask/den is rebuilt in-kernel (free VPU filler).
    inv_den = aff[:, 7:8]                          # [TILE_M, 1]
    w = mask * inv_den                             # [TILE_M, KP2]
    z = (x - mu) * inv_std
    logp = norm_const - 0.5 * (z * z)
    token = jnp.sum(logp * w, axis=-1)             # [TILE_M]

    # ---- get_affines(): constrain raw params with sigmoid ranges ----
    def constrain(v, lo, hi):                      # util.constrain_parameter
        return jax.nn.sigmoid(v) * (hi - lo) + lo

    shift_x = constrain(aff[:, 0:1], -0.2, 0.2)
    shift_y = constrain(aff[:, 1:2], -0.2, 0.2)
    scale_x = constrain(aff[:, 2:3], 0.6, 1.4)
    scale_y = constrain(aff[:, 3:4], 0.6, 1.4)
    rot     = constrain(aff[:, 4:5], -0.25 * math.pi, 0.25 * math.pi)
    shear_x = constrain(aff[:, 5:6], -0.3 * math.pi, 0.3 * math.pi)
    shear_y = constrain(aff[:, 6:7], -0.3 * math.pi, 0.3 * math.pi)

    c = jnp.cos(rot)
    s = jnp.sin(rot)
    # TODO(synk): composition mirrors R @ Shear @ Scale; the exact ordering in
    # util.get_affine_matrix_from_param('7') may differ.
    a11 = scale_x * (c - s * shear_y)
    a12 = scale_y * (c * shear_x - s)
    a21 = scale_x * (s + c * shear_y)
    a22 = scale_y * (s * shear_x + c)

    # ---- util.transform_z_what(..., '7') on the interleaved [x0,y0,x1,y1,...]
    # lane layout.  partner[2i] = y_i, partner[2i+1] = x_i via an even/odd lane
    # swizzle (pltpu.roll rides the otherwise idle XLU slot; wrapped lanes are
    # never selected).
    tile_m = x.shape[0]
    lane = jax.lax.broadcasted_iota(jnp.int32, (tile_m, kp2), 1)
    is_x = (lane % 2) == 0
    partner = jnp.where(is_x,
                        pltpu.roll(x, shift=kp2 - 1, axis=1),   # w[i+1] at even i
                        pltpu.roll(x, shift=1, axis=1))         # w[i-1] at odd  i
    out_x = a11 * x + a12 * partner + shift_x                   # valid at even lanes
    out_y = a21 * partner + a22 * x + shift_y                   # valid at odd lanes
    trans_ref[0] = jnp.where(is_x, out_x, out_y)

    # ---- image score: independent per-pixel Laplace log-likelihood ----
    # TODO(synk): self.gen.img_dist(canvas=recons) is generator-specific; a
    # fixed-scale Laplace pixel likelihood stands in for it.
    rec = recon_ref[0].astype(jnp.float32)          # bf16 -> f32 upcast at use site
    diff = jnp.abs(qry_ref[0] - rec)                # [TILE_M, D]
    img = img_const - jnp.sum(diff, axis=-1) * inv_scale        # [TILE_M]

    # log_score = token_score + image_score, emitted lane-dense.
    score_ref[0, 0, :] = token + img


# --------------------------------------------------------------------------
# Module wrapper
# --------------------------------------------------------------------------
class ClassifyModelPallas:
    """JAX/Pallas port of ClassifyModel (Sequential, direction='q|s') forward."""

    def __init__(self, qs, ss, ps, strks, pts, img_shape, key, img_dist_scale=0.2):
        self.qs, self.ss, self.ps = qs, ss, ps
        self.strks, self.pts = strks, pts
        self.img_shape = img_shape                  # (C, H, W)
        self.img_dist_scale = float(img_dist_scale)
        self._wt_std = 1e-3

        k1, k2, k3, k4, k5 = jax.random.split(key, 5)

        M = ss * ps
        KP2 = strks * pts * 2
        wt_shape = (qs, ss, ps, strks, pts, 2)

        # conditioning latents (deterministic synthetic init; shapes follow __init__)
        self.cond_wt = 0.5 + 0.1 * jax.random.normal(k1, wt_shape, jnp.float32)
        self.cond_wt_std = jnp.full(wt_shape, self._wt_std, jnp.float32)
        pr = (jax.random.uniform(k2, (qs, ss, ps, strks)) > 0.5).astype(jnp.float32)
        self.cond_pr = pr.at[..., 0].set(1.0)       # stroke 0 always on -> denom > 0
        self.cond_wr = jnp.tile(jnp.asarray([0.0, 0.0, 1.0, 0.0], jnp.float32),
                                (qs, ss, ps, strks, 1))

        # optimizable parameters
        self.optm_wt = self.cond_wt + 0.01 * jax.random.normal(k3, wt_shape, jnp.float32)
        self.optm_pr = self.cond_pr
        self.optm_wr = self.cond_wr
        # (torch module inits this to zeros; small random values here so the
        #  affine path is actually exercised and checked by the demo)
        self.affines_param_ = 0.1 * jax.random.normal(k5, (qs, ss, ps, 7), jnp.float32)

        # TODO(synk): `self.gen.renders_imgs` is an external neural/spline renderer;
        # a deterministic synthetic canvas stands in for it.  Stored in bf16 in
        # HBM (dominant stream of the memory-bound kernel); upcast in-kernel.
        C, H, W = img_shape
        self.recons = jax.random.uniform(
            k4, (qs * ss, ps, C, H, W), jnp.float32).astype(jnp.bfloat16)

        # --- static kernel operands, precomputed once (cond_* never change) ---
        self._mu = self.cond_wt.reshape(qs, M, KP2)            # lane-dense mean, f32
        den = self.cond_pr.sum(-1, keepdims=True)              # strks_per_samp
        self._inv_den = (1.0 / den).reshape(qs, M, 1).astype(jnp.float32)
        mask = jnp.broadcast_to(self.cond_pr[..., None, None], wt_shape)
        self._mask = mask.reshape(qs, M, KP2).astype(jnp.bfloat16)  # {0,1}: exact

    def forward(self, qry_img):
        qs, ss, ps, K, P = self.qs, self.ss, self.ps, self.strks, self.pts
        M = ss * ps
        KP2 = K * P * 2
        C, H, W = self.img_shape
        D = C * H * W

        # Free (contiguous) reshapes into the kernel layout.
        x = self.optm_wt.reshape(qs, M, KP2)         # interleaved x/y on the lane axis
        # Raw affines (lanes 0..6) + per-row 1/strokes_per_sample (lane 7): the
        # f32 1/den rides the already-128-lane-padded aff buffer for free.
        aff_ext = jnp.concatenate(
            [self.affines_param_.reshape(qs, M, 7), self._inv_den], axis=-1)
        recon = self.recons.reshape(qs, M, D)         # bf16 stream
        qry = qry_img.reshape(qs, 1, D)               # NOT broadcast to ss*ps copies

        ws_budget, vmem_limit = _vmem_budgets()
        tile_m = _pick_tile_m(M, D, KP2, ws_budget)
        m_tiles = M // tile_m

        # Bias megacore sharding to the q axis when possible: each TensorCore
        # keeps its own qry block resident and streams contiguous per-q recon.
        dims = ("parallel", "arbitrary") if qs > 1 else ("arbitrary", "parallel")

        kernel = functools.partial(
            fused_classify_kernel,
            inv_std=1.0 / self._wt_std,
            norm_const=-(math.log(self._wt_std) + 0.5 * _LOG_2PI),
            inv_scale=1.0 / self.img_dist_scale,
            img_const=-float(D) * math.log(2.0 * self.img_dist_scale),
            kp2=KP2,
        )

        # TODO(synk): if the call pattern is "many qry_img vs fixed optm_wt/affines",
        # split the qry-independent token+transform path into a cached call and keep
        # only the recon/qry Laplace reduce per call.
        score, trans = pl.pallas_call(
            kernel,
            out_shape=(jax.ShapeDtypeStruct((qs, 1, M), jnp.float32),     # log_score
                       jax.ShapeDtypeStruct((qs, M, KP2), jnp.float32)),  # trans_optm_wt
            grid=(qs, m_tiles),
            in_specs=[
                pl.BlockSpec((1, tile_m, KP2), lambda q, m: (q, m, 0)),   # cond_wt (mu)
                pl.BlockSpec((1, tile_m, KP2), lambda q, m: (q, m, 0)),   # optm_wt
                pl.BlockSpec((1, tile_m, KP2), lambda q, m: (q, m, 0)),   # stroke mask (bf16)
                pl.BlockSpec((1, tile_m, 8),   lambda q, m: (q, m, 0)),   # affines + 1/den
                # TODO(synk): on v7x, if profiling shows exposed recon DMA after
                # tiles shrink to fit 64 MiB, add pipeline_mode=pl.Buffered(3) here.
                pl.BlockSpec((1, tile_m, D),   lambda q, m: (q, m, 0)),   # recons (bf16)
                pl.BlockSpec((1, 1, D),        lambda q, m: (q, 0, 0)),   # qry (reused over m)
            ],
            out_specs=(
                pl.BlockSpec((1, 1, tile_m),   lambda q, m: (q, 0, m)),   # lane-dense score
                pl.BlockSpec((1, tile_m, KP2), lambda q, m: (q, m, 0)),   # transformed pts
            ),
            compiler_params=pltpu.CompilerParams(
                dimension_semantics=dims,
                vmem_limit_bytes=vmem_limit,
            ),
        )(self._mu, x, self._mask, aff_ext, recon, qry)

        log_score = score.reshape(qs, ss, ps)
        self.trans_optm_wt = trans.reshape(qs, ss, ps, K, P, 2)

        # API parity with the torch module (repeated query image); kept out of
        # the kernel's HBM traffic.
        qry_rep = jnp.broadcast_to(
            qry_img[:, None, None], (qs, ss, ps, C, H, W)
        ).reshape(qs * ss, ps, C, H, W)
        return log_score, self.recons, qry_rep, None


# --------------------------------------------------------------------------
# Pure-JAX reference (validation only)
# --------------------------------------------------------------------------
def _reference_forward(model, qry_img):
    qs, ss, ps = model.qs, model.ss, model.ps
    C, H, W = model.img_shape
    std = model._wt_std
    b = model.img_dist_scale

    z = (model.optm_wt - model.cond_wt) / std
    logp = -0.5 * z * z - math.log(std) - 0.5 * _LOG_2PI
    per_strk = logp.sum(axis=(-1, -2))                               # [qs,ss,ps,K]
    token = (per_strk * model.cond_pr).sum(-1) / model.cond_pr.sum(-1)

    aff = model.affines_param_

    def constrain(v, lo, hi):
        return jax.nn.sigmoid(v) * (hi - lo) + lo

    shift_x = constrain(aff[..., 0:1], -0.2, 0.2)[..., None]
    shift_y = constrain(aff[..., 1:2], -0.2, 0.2)[..., None]
    scale_x = constrain(aff[..., 2:3], 0.6, 1.4)[..., None]
    scale_y = constrain(aff[..., 3:4], 0.6, 1.4)[..., None]
    rot     = constrain(aff[..., 4:5], -0.25 * math.pi, 0.25 * math.pi)[..., None]
    shear_x = constrain(aff[..., 5:6], -0.3 * math.pi, 0.3 * math.pi)[..., None]
    shear_y = constrain(aff[..., 6:7], -0.3 * math.pi, 0.3 * math.pi)[..., None]
    c, s = jnp.cos(rot), jnp.sin(rot)
    a11 = scale_x * (c - s * shear_y)
    a12 = scale_y * (c * shear_x - s)
    a21 = scale_x * (s + c * shear_y)
    a22 = scale_y * (s * shear_x + c)
    px = model.optm_wt[..., 0]
    py = model.optm_wt[..., 1]
    tx = a11 * px + a12 * py + shift_x
    ty = a21 * px + a22 * py + shift_y
    trans = jnp.stack([tx, ty], axis=-1)

    recon = model.recons.astype(jnp.float32).reshape(qs, ss, ps, C * H * W)
    qry = qry_img.reshape(qs, 1, 1, C * H * W)
    img = (-jnp.abs(qry - recon) / b - math.log(2.0 * b)).sum(-1)
    return token + img, trans


if __name__ == "__main__":
    key = jax.random.PRNGKey(0)
    qs, ss, ps, strks, pts = 2, 2, 1, 4, 5          # small demo shapes
    C, H, W = 1, 16, 16

    model = ClassifyModelPallas(qs, ss, ps, strks, pts, (C, H, W), key)
    qry_img = jax.random.uniform(jax.random.fold_in(key, 99),
                                 (qs, C, H, W), jnp.float32)

    log_score, recons, qry_rep, _ = model.forward(qry_img)
    jax.block_until_ready(log_score)

    assert log_score.shape == (qs, ss, ps)
    assert recons.shape == (qs * ss, ps, C, H, W)
    assert qry_rep.shape == (qs * ss, ps, C, H, W)
    assert model.trans_optm_wt.shape == (qs, ss, ps, strks, pts, 2)

    ref_score, ref_trans = _reference_forward(model, qry_img)
    assert bool(jnp.allclose(log_score, ref_score, rtol=1e-3, atol=1e-2)), \
        "log_score mismatch vs pure-JAX reference"
    assert bool(jnp.allclose(model.trans_optm_wt, ref_trans, rtol=1e-3, atol=1e-3)), \
        "trans_optm_wt mismatch vs pure-JAX reference"

    print("KERNEL_OK")
</pallas_src>

<mosaic_0001>
module attributes {stable_mosaic.version = 11 : i64} {
  func.func @fused_classify_kernel(%arg0: i32, %arg1: i32, %arg2: memref<1x2x40xf32, #tpu.memory_space<vmem>>, %arg3: memref<1x2x40xf32, #tpu.memory_space<vmem>>, %arg4: memref<1x2x40xbf16, #tpu.memory_space<vmem>>, %arg5: memref<1x2x8xf32, #tpu.memory_space<vmem>>, %arg6: memref<1x2x256xbf16, #tpu.memory_space<vmem>>, %arg7: memref<1x1x256xf32, #tpu.memory_space<vmem>>, %arg8: memref<1x1x2xf32, #tpu.memory_space<vmem>>, %arg9: memref<1x2x40xf32, #tpu.memory_space<vmem>>) attributes {dimension_semantics = [#tpu.dimension_semantics<parallel>, #tpu.dimension_semantics<arbitrary>], iteration_bounds = array<i64: 2, 1>, scalar_prefetch = 0 : i64, scratch_operands = 0 : i64, tpu.core_type = #tpu.core_type<tc>, window_params = [{transform_indices = @transform_0, window_bounds = array<i64: 1, 2, 40>}, {transform_indices = @transform_1, window_bounds = array<i64: 1, 2, 40>}, {transform_indices = @transform_2, window_bounds = array<i64: 1, 2, 40>}, {transform_indices = @transform_3, window_bounds = array<i64: 1, 2, 8>}, {transform_indices = @transform_4, window_bounds = array<i64: 1, 2, 256>}, {transform_indices = @transform_5, window_bounds = array<i64: 1, 1, 256>}, {transform_indices = @transform_6, window_bounds = array<i64: 1, 1, 2>}, {transform_indices = @transform_7, window_bounds = array<i64: 1, 2, 40>}]} {
    %c0 = arith.constant 0 : index
    %c0_0 = arith.constant 0 : index
    %c0_1 = arith.constant 0 : index
    %0 = vector.load %arg2[%c0, %c0_0, %c0_1] : memref<1x2x40xf32, #tpu.memory_space<vmem>>, vector<1x2x40xf32>
    %1 = vector.shape_cast %0 : vector<1x2x40xf32> to vector<2x40xf32>
    %c0_2 = arith.constant 0 : index
    %c0_3 = arith.constant 0 : index
    %c0_4 = arith.constant 0 : index
    %2 = vector.load %arg3[%c0_2, %c0_3, %c0_4] : memref<1x2x40xf32, #tpu.memory_space<vmem>>, vector<1x2x40xf32>
    %3 = vector.shape_cast %2 : vector<1x2x40xf32> to vector<2x40xf32>
    %c0_5 = arith.constant 0 : index
    %c0_6 = arith.constant 0 : index
    %c0_7 = arith.constant 0 : index
    %4 = vector.load %arg4[%c0_5, %c0_6, %c0_7] : memref<1x2x40xbf16, #tpu.memory_space<vmem>>, vector<1x2x40xbf16>
    %5 = vector.shape_cast %4 : vector<1x2x40xbf16> to vector<2x40xbf16>
    %6 = arith.extf %5 : vector<2x40xbf16> to vector<2x40xf32>
    %c0_8 = arith.constant 0 : index
    %c0_9 = arith.constant 0 : index
    %c0_10 = arith.constant 0 : index
    %7 = vector.load %arg5[%c0_8, %c0_9, %c0_10] : memref<1x2x8xf32, #tpu.memory_space<vmem>>, vector<1x2x8xf32>
    %8 = vector.shape_cast %7 : vector<1x2x8xf32> to vector<2x8xf32>
    %9 = vector.extract_strided_slice %8 {offsets = [0, 7], sizes = [2, 1], strides = [1, 1]} : vector<2x8xf32> to vector<2x1xf32>
    %10 = vector.broadcast %9 : vector<2x1xf32> to vector<2x40xf32>
    %11 = arith.mulf %6, %10 : vector<2x40xf32>
    %12 = arith.subf %3, %1 : vector<2x40xf32>
    %cst = arith.constant 1.000000e+03 : f32
    %13 = vector.broadcast %cst : f32 to vector<2x40xf32>
    %14 = arith.mulf %12, %13 : vector<2x40xf32>
    %15 = arith.mulf %14, %14 : vector<2x40xf32>
    %cst_11 = arith.constant 5.000000e-01 : f32
    %16 = vector.broadcast %cst_11 : f32 to vector<2x40xf32>
    %17 = arith.mulf %16, %15 : vector<2x40xf32>
    %cst_12 = arith.constant 5.98881674 : f32
    %18 = vector.broadcast %cst_12 : f32 to vector<2x40xf32>
    %19 = arith.subf %18, %17 : vector<2x40xf32>
    %20 = arith.mulf %19, %11 : vector<2x40xf32>
    %cst_13 = arith.constant dense<0.000000e+00> : vector<2xf32>
    %21 = vector.multi_reduction <add>, %20, %cst_13 [1] : vector<2x40xf32> to vector<2xf32>
    %22 = vector.extract_strided_slice %8 {offsets = [0, 0], sizes = [2, 1], strides = [1, 1]} : vector<2x8xf32> to vector<2x1xf32>
    %23 = arith.negf %22 : vector<2x1xf32>
    %24 = math.exp %23 : vector<2x1xf32>
    %cst_14 = arith.constant 1.000000e+00 : f32
    %25 = vector.broadcast %cst_14 : f32 to vector<2x1xf32>
    %26 = arith.addf %25, %24 : vector<2x1xf32>
    %27 = arith.divf %25, %26 : vector<2x1xf32>
    %cst_15 = arith.constant 4.000000e-01 : f32
    %28 = vector.broadcast %cst_15 : f32 to vector<2x1xf32>
    %29 = arith.mulf %27, %28 : vector<2x1xf32>
    %cst_16 = arith.constant -2.000000e-01 : f32
    %30 = vector.broadcast %cst_16 : f32 to vector<2x1xf32>
    %31 = arith.addf %29, %30 : vector<2x1xf32>
    %32 = vector.extract_strided_slice %8 {offsets = [0, 1], sizes = [2, 1], strides = [1, 1]} : vector<2x8xf32> to vector<2x1xf32>
    %33 = arith.negf %32 : vector<2x1xf32>
    %34 = math.exp %33 : vector<2x1xf32>
    %cst_17 = arith.constant 1.000000e+00 : f32
    %35 = vector.broadcast %cst_17 : f32 to vector<2x1xf32>
    %36 = arith.addf %35, %34 : vector<2x1xf32>
    %37 = arith.divf %35, %36 : vector<2x1xf32>
    %cst_18 = arith.constant 4.000000e-01 : f32
    %38 = vector.broadcast %cst_18 : f32 to vector<2x1xf32>
    %39 = arith.mulf %37, %38 : vector<2x1xf32>
    %cst_19 = arith.constant -2.000000e-01 : f32
    %40 = vector.broadcast %cst_19 : f32 to vector<2x1xf32>
    %41 = arith.addf %39, %40 : vector<2x1xf32>
    %42 = vector.extract_strided_slice %8 {offsets = [0, 2], sizes = [2, 1], strides = [1, 1]} : vector<2x8xf32> to vector<2x1xf32>
    %43 = arith.negf %42 : vector<2x1xf32>
    %44 = math.exp %43 : vector<2x1xf32>
    %cst_20 = arith.constant 1.000000e+00 : f32
    %45 = vector.broadcast %cst_20 : f32 to vector<2x1xf32>
    %46 = arith.addf %45, %44 : vector<2x1xf32>
    %47 = arith.divf %45, %46 : vector<2x1xf32>
    %cst_21 = arith.constant 8.000000e-01 : f32
    %48 = vector.broadcast %cst_21 : f32 to vector<2x1xf32>
    %49 = arith.mulf %47, %48 : vector<2x1xf32>
    %cst_22 = arith.constant 6.000000e-01 : f32
    %50 = vector.broadcast %cst_22 : f32 to vector<2x1xf32>
    %51 = arith.addf %49, %50 : vector<2x1xf32>
    %52 = vector.extract_strided_slice %8 {offsets = [0, 3], sizes = [2, 1], strides = [1, 1]} : vector<2x8xf32> to vector<2x1xf32>
    %53 = arith.negf %52 : vector<2x1xf32>
    %54 = math.exp %53 : vector<2x1xf32>
    %cst_23 = arith.constant 1.000000e+00 : f32
    %55 = vector.broadcast %cst_23 : f32 to vector<2x1xf32>
    %56 = arith.addf %55, %54 : vector<2x1xf32>
    %57 = arith.divf %55, %56 : vector<2x1xf32>
    %cst_24 = arith.constant 8.000000e-01 : f32
    %58 = vector.broadcast %cst_24 : f32 to vector<2x1xf32>
    %59 = arith.mulf %57, %58 : vector<2x1xf32>
    %cst_25 = arith.constant 6.000000e-01 : f32
    %60 = vector.broadcast %cst_25 : f32 to vector<2x1xf32>
    %61 = arith.addf %59, %60 : vector<2x1xf32>
    %62 = vector.extract_strided_slice %8 {offsets = [0, 4], sizes = [2, 1], strides = [1, 1]} : vector<2x8xf32> to vector<2x1xf32>
    %63 = arith.negf %62 : vector<2x1xf32>
    %64 = math.exp %63 : vector<2x1xf32>
    %cst_26 = arith.constant 1.000000e+00 : f32
    %65 = vector.broadcast %cst_26 : f32 to vector<2x1xf32>
    %66 = arith.addf %65, %64 : vector<2x1xf32>
    %67 = arith.divf %65, %66 : vector<2x1xf32>
    %cst_27 = arith.constant 1.57079637 : f32
    %68 = vector.broadcast %cst_27 : f32 to vector<2x1xf32>
    %69 = arith.mulf %67, %68 : vector<2x1xf32>
    %cst_28 = arith.constant -0.785398185 : f32
    %70 = vector.broadcast %cst_28 : f32 to vector<2x1xf32>
    %71 = arith.addf %69, %70 : vector<2x1xf32>
    %72 = vector.extract_strided_slice %8 {offsets = [0, 5], sizes = [2, 1], strides = [1, 1]} : vector<2x8xf32> to vector<2x1xf32>
    %73 = arith.negf %72 : vector<2x1xf32>
    %74 = math.exp %73 : vector<2x1xf32>
    %cst_29 = arith.constant 1.000000e+00 : f32
    %75 = vector.broadcast %cst_29 : f32 to vector<2x1xf32>
    %76 = arith.addf %75, %74 : vector<2x1xf32>
    %77 = arith.divf %75, %76 : vector<2x1xf32>
    %cst_30 = arith.constant 1.88495564 : f32
    %78 = vector.broadcast %cst_30 : f32 to vector<2x1xf32>
    %79 = arith.mulf %77, %78 : vector<2x1xf32>
    %cst_31 = arith.constant -0.942477822 : f32
    %80 = vector.broadcast %cst_31 : f32 to vector<2x1xf32>
    %81 = arith.addf %79, %80 : vector<2x1xf32>
    %82 = vector.extract_strided_slice %8 {offsets = [0, 6], sizes = [2, 1], strides = [1, 1]} : vector<2x8xf32> to vector<2x1xf32>
    %83 = arith.negf %82 : vector<2x1xf32>
    %84 = math.exp %83 : vector<2x1xf32>
    %cst_32 = arith.constant 1.000000e+00 : f32
    %85 = vector.broadcast %cst_32 : f32 to vector<2x1xf32>
    %86 = arith.addf %85, %84 : vector<2x1xf32>
    %87 = arith.divf %85, %86 : vector<2x1xf32>
    %cst_33 = arith.constant 1.88495564 : f32
    %88 = vector.broadcast %cst_33 : f32 to vector<2x1xf32>
    %89 = arith.mulf %87, %88 : vector<2x1xf32>
    %cst_34 = arith.constant -0.942477822 : f32
    %90 = vector.broadcast %cst_34 : f32 to vector<2x1xf32>
    %91 = arith.addf %89, %90 : vector<2x1xf32>
    %92 = math.cos %71 : vector<2x1xf32>
    %93 = math.sin %71 : vector<2x1xf32>
    %94 = arith.mulf %93, %91 : vector<2x1xf32>
    %95 = arith.subf %92, %94 : vector<2x1xf32>
    %96 = arith.mulf %51, %95 : vector<2x1xf32>
    %97 = arith.mulf %92, %81 : vector<2x1xf32>
    %98 = arith.subf %97, %93 : vector<2x1xf32>
    %99 = arith.mulf %61, %98 : vector<2x1xf32>
    %100 = arith.mulf %92, %91 : vector<2x1xf32>
    %101 = arith.addf %93, %100 : vector<2x1xf32>
    %102 = arith.mulf %51, %101 : vector<2x1xf32>
    %103 = arith.mulf %93, %81 : vector<2x1xf32>
    %104 = arith.addf %103, %92 : vector<2x1xf32>
    %105 = arith.mulf %61, %104 : vector<2x1xf32>
    %106 = tpu.iota {dimensions = array<i32: 1>} : vector<2x40xi32>
    %c2_i32 = arith.constant 2 : i32
    %c0_i32 = arith.constant 0 : i32
    %107 = arith.cmpi eq, %c2_i32, %c0_i32 : i32
    %c1_i32 = arith.constant 1 : i32
    %108 = arith.select %107, %c1_i32, %c2_i32 : i32
    %109 = vector.broadcast %108 : i32 to vector<2x40xi32>
    %110 = arith.remsi %106, %109 : vector<2x40xi32>
    %c0_i32_35 = arith.constant 0 : i32
    %111 = vector.broadcast %c0_i32_35 : i32 to vector<2x40xi32>
    %112 = arith.cmpi ne, %110, %111 : vector<2x40xi32>
    %c0_i32_36 = arith.constant 0 : i32
    %113 = vector.broadcast %c0_i32_36 : i32 to vector<2x40xi32>
    %114 = arith.cmpi slt, %110, %113 : vector<2x40xi32>
    %c0_i32_37 = arith.constant 0 : i32
    %115 = arith.cmpi slt, %108, %c0_i32_37 : i32
    %116 = vector.broadcast %115 : i1 to vector<2x40xi1>
    %117 = vector.broadcast %116 : vector<2x40xi1> to vector<2x40xi1>
    %118 = arith.xori %114, %117 : vector<2x40xi1>
    %119 = arith.andi %118, %112 : vector<2x40xi1>
    %120 = vector.broadcast %108 : i32 to vector<2x40xi32>
    %121 = arith.addi %110, %120 : vector<2x40xi32>
    %122 = arith.select %119, %121, %110 : vector<2x40xi1>, vector<2x40xi32>
    %c0_i32_38 = arith.constant 0 : i32
    %123 = vector.broadcast %c0_i32_38 : i32 to vector<2x40xi32>
    %124 = arith.cmpi eq, %122, %123 : vector<2x40xi32>
    %c39_i32 = arith.constant 39 : i32
    %125 = tpu.dynamic_rotate %3 by %c39_i32 dim 1 : vector<2x40xf32>, i32 -> vector<2x40xf32>
    %c1_i32_39 = arith.constant 1 : i32
    %126 = tpu.dynamic_rotate %3 by %c1_i32_39 dim 1 : vector<2x40xf32>, i32 -> vector<2x40xf32>
    %127 = arith.select %124, %125, %126 : vector<2x40xi1>, vector<2x40xf32>
    %128 = vector.broadcast %96 : vector<2x1xf32> to vector<2x40xf32>
    %129 = arith.mulf %128, %3 : vector<2x40xf32>
    %130 = vector.broadcast %99 : vector<2x1xf32> to vector<2x40xf32>
    %131 = arith.mulf %130, %127 : vector<2x40xf32>
    %132 = arith.addf %129, %131 : vector<2x40xf32>
    %133 = vector.broadcast %31 : vector<2x1xf32> to vector<2x40xf32>
    %134 = arith.addf %132, %133 : vector<2x40xf32>
    %135 = vector.broadcast %102 : vector<2x1xf32> to vector<2x40xf32>
    %136 = arith.mulf %135, %127 : vector<2x40xf32>
    %137 = vector.broadcast %105 : vector<2x1xf32> to vector<2x40xf32>
    %138 = arith.mulf %137, %3 : vector<2x40xf32>
    %139 = arith.addf %136, %138 : vector<2x40xf32>
    %140 = vector.broadcast %41 : vector<2x1xf32> to vector<2x40xf32>
    %141 = arith.addf %139, %140 : vector<2x40xf32>
    %142 = arith.select %124, %134, %141 : vector<2x40xi1>, vector<2x40xf32>
    %c0_40 = arith.constant 0 : index
    %c0_41 = arith.constant 0 : index
    %c0_42 = arith.constant 0 : index
    %143 = vector.load %arg9[%c0_40, %c0_41, %c0_42] : memref<1x2x40xf32, #tpu.memory_space<vmem>>, vector<1x2x40xf32>
    %144 = vector.shape_cast %143 : vector<1x2x40xf32> to vector<2x40xf32>
    %145 = vector.shape_cast %142 : vector<2x40xf32> to vector<1x2x40xf32>
    tpu.vector_store %arg9[%c0_40, %c0_41, %c0_42], %145 {strides = array<i32>} : memref<1x2x40xf32, #tpu.memory_space<vmem>>, vector<1x2x40xf32>,
    %c0_43 = arith.constant 0 : index
    %c0_44 = arith.constant 0 : index
    %c0_45 = arith.constant 0 : index
    %146 = vector.load %arg6[%c0_43, %c0_44, %c0_45] : memref<1x2x256xbf16, #tpu.memory_space<vmem>>, vector<1x2x256xbf16>
    %147 = vector.shape_cast %146 : vector<1x2x256xbf16> to vector<2x256xbf16>
    %148 = arith.extf %147 : vector<2x256xbf16> to vector<2x256xf32>
    %c0_46 = arith.constant 0 : index
    %c0_47 = arith.constant 0 : index
    %c0_48 = arith.constant 0 : index
    %149 = vector.load %arg7[%c0_46, %c0_47, %c0_48] : memref<1x1x256xf32, #tpu.memory_space<vmem>>, vector<1x1x256xf32>
    %150 = vector.shape_cast %149 : vector<1x1x256xf32> to vector<1x256xf32>
    %151 = vector.broadcast %150 : vector<1x256xf32> to vector<2x256xf32>
    %152 = arith.subf %151, %148 : vector<2x256xf32>
    %153 = math.absf %152 : vector<2x256xf32>
    %cst_49 = arith.constant dense<0.000000e+00> : vector<2xf32>
    %154 = vector.multi_reduction <add>, %153, %cst_49 [1] : vector<2x256xf32> to vector<2xf32>
    %cst_50 = arith.constant 5.000000e+00 : f32
    %155 = vector.broadcast %cst_50 : f32 to vector<2xf32>
    %156 = arith.mulf %154, %155 : vector<2xf32>
    %cst_51 = arith.constant 234.570435 : f32
    %157 = vector.broadcast %cst_51 : f32 to vector<2xf32>
    %158 = arith.subf %157, %156 : vector<2xf32>
    %159 = arith.addf %21, %158 : vector<2xf32>
    %c0_52 = arith.constant 0 : index
    %c0_53 = arith.constant 0 : index
    %c0_54 = arith.constant 0 : index
    %160 = vector.load %arg8[%c0_52, %c0_53, %c0_54] : memref<1x1x2xf32, #tpu.memory_space<vmem>>, vector<1x1x2xf32>
    %161 = vector.shape_cast %160 : vector<1x1x2xf32> to vector<2xf32>
    %162 = vector.shape_cast %159 : vector<2xf32> to vector<1x1x2xf32>
    tpu.vector_store %arg8[%c0_52, %c0_53, %c0_54], %162 {strides = array<i32>} : memref<1x1x2xf32, #tpu.memory_space<vmem>>, vector<1x1x2xf32>,
    return
  }
  func.func @transform_0(%arg0: i32, %arg1: i32) -> (i32, i32, i32) {
    %c0_i32 = arith.constant 0 : i32
    %c0_i32_0 = arith.constant 0 : i32
    return %arg0, %arg1, %c0_i32 : i32, i32, i32
  }
  func.func @transform_1(%arg0: i32, %arg1: i32) -> (i32, i32, i32) {
    %c0_i32 = arith.constant 0 : i32
    %c0_i32_0 = arith.constant 0 : i32
    return %arg0, %arg1, %c0_i32 : i32, i32, i32
  }
  func.func @transform_2(%arg0: i32, %arg1: i32) -> (i32, i32, i32) {
    %c0_i32 = arith.constant 0 : i32
    %c0_i32_0 = arith.constant 0 : i32
    return %arg0, %arg1, %c0_i32 : i32, i32, i32
  }
  func.func @transform_3(%arg0: i32, %arg1: i32) -> (i32, i32, i32) {
    %c0_i32 = arith.constant 0 : i32
    %c0_i32_0 = arith.constant 0 : i32
    return %arg0, %arg1, %c0_i32 : i32, i32, i32
  }
  func.func @transform_4(%arg0: i32, %arg1: i32) -> (i32, i32, i32) {
    %c0_i32 = arith.constant 0 : i32
    %c0_i32_0 = arith.constant 0 : i32
    return %arg0, %arg1, %c0_i32 : i32, i32, i32
  }
  func.func @transform_5(%arg0: i32, %arg1: i32) -> (i32, i32, i32) {
    %c0_i32 = arith.constant 0 : i32
    %c0_i32_0 = arith.constant 0 : i32
    %c0_i32_1 = arith.constant 0 : i32
    return %arg0, %c0_i32, %c0_i32_0 : i32, i32, i32
  }
  func.func @transform_6(%arg0: i32, %arg1: i32) -> (i32, i32, i32) {
    %c0_i32 = arith.constant 0 : i32
    %c0_i32_0 = arith.constant 0 : i32
    return %arg0, %c0_i32, %arg1 : i32, i32, i32
  }
  func.func @transform_7(%arg0: i32, %arg1: i32) -> (i32, i32, i32) {
    %c0_i32 = arith.constant 0 : i32
    %c0_i32_0 = arith.constant 0 : i32
    return %arg0, %arg1, %c0_i32 : i32, i32, i32
  }
}

</mosaic_0001>

<bundles_post_ra>
// kernel: tpu_custom_call.1
= control target key start
LH: loop header
LB: loop body
LE: loop exit
PB: predicated region body
PF: predicated region fallthrough
CT: control target
= control target key end

     0   :  { %s1803_s0 = inlined_call_operand.hbm [shape: f32[2,2,40], index: 0, kind: input, shape index: {}]   ;;  %s1804_s1 = inlined_call_operand.hbm [shape: f32[2,2,40], index: 1, kind: input, shape index: {}]   ;;  %s1805_s2 = inlined_call_operand.vmem [shape: bf16[2,2,40], index: 2, kind: input, shape index: {}]   ;;  %s1806_s3 = inlined_call_operand.vmem [shape: f32[2,2,8], index: 3, kind: input, shape index: {}]   ;;  %s1807_s4 = inlined_call_operand.vmem [shape: bf16[2,2,256], index: 4, kind: input, shape index: {}]   ;;  %s1808_s5 = inlined_call_operand.vmem [shape: f32[2,1,256], index: 5, kind: input, shape index: {}]   ;;  %s1809_s6 = inlined_call_operand.hbm [shape: f32[2,1,2], index: 6, kind: output, shape index: {0}]   ;;  %s1810_s7 = inlined_call_operand.hbm [shape: f32[2,2,40], index: 7, kind: output, shape index: {1}]  }
   0x1   :  { %1816 = sst [smem:[#allocation15_spill]] %s1803_s0 }
   0x2   :  { %13 = vsyncpa [#allocation3], 0 }
   0x3   :  { %15 = vsyncpa [#allocation3 + $0x1], 0 }
   0x4   :  { %16 = vsyncpa [#allocation6], 0 }
   0x5   :  { %18 = vsyncpa [#allocation6 + $0x1], 0 }
   0x6   :  { %19 = vsyncpa [#allocation4], 0 }
   0x7   :  { %21 = vsyncpa [#allocation4 + $0x1], 0 }
   0x8   :  { %22 = vsyncpa [#allocation9], 0 }
   0x9   :  { %24 = vsyncpa [#allocation9 + $0x1], 0  ;;  %s1456_s24 = smov 0   ;;  %s1458_s25 = smov 0  }
   0xa   :  { %s1460_s26 = smov 0   ;;  %s1462_s27 = smov 0  }
   0xb   :  { %s1464_s28 = smov 0   ;;  %s1466_s29 = smov 0  }
   0xc LB: > { %s1079_s30 = sadd.s32 4294967295, %s1394_s29   ;;  %s1080_s8 = sadd.s32 4294967294, %s1394_s29   ;;  %s1394_s29 = sphi %s1466_s29, %s30_s29   ;;  %s1390_s28 = sphi %s1464_s28, %s1841_s28   ;;  %s1386_s27 = sphi %s1462_s27, %s1840_s27   ;;  %s1382_s26 = sphi %s1460_s26, %s1839_s26   ;;  %s1378_s25 = sphi %s1458_s25, %s1838_s25   ;;  %s1374_s24 = sphi %s1456_s24, %s1837_s24  }
   0xd   : > { %s42_s9 = sadd.s32 1, %s1390_s28  ;;  %s51_s10 = sadd.s32 1, %s1382_s26 }
   0xe   : > { %p44_p0 = scmp.ge.s32.totalorder %s42_s9, 2  ;;  %p58_p1 = scmp.ne.s32.totalorder %s1382_s26, %s1378_s25 }
   0xf   : > { %p59_p2 = scmp.eq.s32.totalorder %s1394_s29, 0  ;;  %p64_p3 = scmp.ne.s32.totalorder %s1378_s25, %s1374_s24 }
  0x10   : > { %s1843_s9 = smov (%p44_p0, %s42_s9), 0  ;;  %p65_p5 = scmp.eq.s32.totalorder %s1079_s30, 0 }
  0x11   : > { %1817 = sst [smem:[#allocation14_spill]] %s1843_s9  ;;  %p1497_p4 = por %p59_p2, %p58_p1 }
  0x12   : > { %s46_s12 = ssub.s32 %s1390_s28, %s1843_s9  ;;  %p228_p6 = scmp.eq.s32.totalorder %s1079_s30, 1 }
  0x13   : > { %p49_p7 = scmp.eq.s32.totalorder %s46_s12, 0  ;;  %p1503_p8 = por %p65_p5, %p64_p3 }
  0x14   : > { %p1507_p9 = por %p228_p6, %p58_p1  ;;  %p234_p10 = scmp.eq.s32.totalorder %s1080_s8, 1 }
  0x15   : > { %s1819_s13 = scalar_select %p1503_p8, 1, 0 }
  0x16   : > { %s1820_s14 = scalar_select %p1507_p9, 1, 0 }
  0x17   : > { %s1512_s15 = scalar_select %p49_p7, %s1382_s26, %s51_s10  }
  0x18   : > { %p1514_p11 = por %p234_p10, %p64_p3  ;;  %p1134_p13 = scmp.lt.s32.totalorder %s1394_s29, 2 }
  0x19   : > { %s1521_s17 = sand.u32 1, %s1382_s26   ;;  %s1812_s19 = sshll.u32 %s1390_s28, 5 }
  0x1a   : > { %s1821_s16 = scalar_select %p1514_p11, 1, 0 }
  0x1b   : > { %s1811_s18 = sshll.u32 %s1521_s17, 1  ;;  %s1822_s0 = sld [smem:[#allocation15_spill]] }
  0x1c   : > { %s286_s23 = scalar_lea.vmem [#allocation2], %s1811_s18  ;;  %p1538_p0 = pnand %p1134_p13, %p1497_p4 }
  0x1d   : > { %s294_s30 = sshll.u32 %s286_s23, 4  ;;  %s283_s10 = scalar_lea.sflag [#allocation3], %s1521_s17  ;;  %s1534_s30 = int_to_ptr.vmem [resolvable:$true] %s294_s30 }
  0x1e   : > { %p1218_p5 = pneg %p1538_p0 }
  0x21   : > { %s1530_s22 = scalar_lea.hbm %s1822_s0, %s1812_s19  ;;  %s1221_s11 = scalar_lea.hbm %s1822_s0, 64 }
  0x22   : > { %s1216_s12 = scalar_lea.hbm %s1530_s22, 32  ;;  %p1222_p4 = scmp.lt.u32.totalorder %s1530_s22, %s1822_s0 }
  0x23   : > { %p1217_p3 = scmp.ne.s32.totalorder %s1530_s22, %s1216_s12  ;;  %p1223_p10 = scmp.lt.u32.totalorder %s1221_s11, %s1216_s12 }
  0x24   : > { %p1225_p12 = scmp.lt.u32.totalorder %s1216_s12, %s1530_s22 }
  0x25   : > { %p1219_p6 = pnand %p1218_p5, %p1217_p3  ;;  %p1224_p13 = por %p1223_p10, %p1222_p4 }
  0x27   : > { %p1220_p7 = pneg %p1219_p6  ;;  %p1226_p1 = por %p1225_p12, %p1224_p13 }
  0x29   : > { %p1227_p2 = pnand %p1226_p1, %p1220_p7 }
  0x2b   : > { %1230 = shalt.err (!%p1227_p2)
}
  0x2c   : > { %s1231_s19 = scalar_lea.vmem %s1534_s30, 32  ;;  %s1396_s20 = smov [#allocation2]  }
  0x2d   : > { %p1232_p3 = scmp.ne.s32.totalorder %s1534_s30, %s1231_s19  ;;  %s1236_s21 = sshll.u32 %s1396_s20, 4  ;;  %s1237_s21 = int_to_ptr.vmem [resolvable:$false] %s1236_s21 }
  0x2e   : > { %s1238_s18 = scalar_lea.vmem %s1237_s21, 64  ;;  %p1239_p9 = scmp.lt.s32.totalorder %s1534_s30, %s1237_s21 }
  0x2f   : > { %p1234_p6 = pnand %p1232_p3, %p1218_p5  ;;  %p1240_p4 = scmp.lt.s32.totalorder %s1238_s18, %s1231_s19 }
  0x31   : > { %p1235_p11 = pneg %p1234_p6  ;;  %p1241_p10 = por %p1240_p4, %p1239_p9 }
  0x33   : > { %p1242_p12 = pnand %p1241_p10, %p1235_p11 }
  0x35   : > { %1245 = shalt.err (!%p1242_p12)
}
  0x36   : > { %1123 = dma.hbm_to_vmem [thread:$0]  (!%p1538_p0), %s1530_s22, 32, %s1534_s30, %s283_s10  }
  0x37   : > { %p1824_p1 = scmp.lt.s32.totalorder %s1394_s29, 3  ;;  %p1825_p2 = scmp.ge.s32.totalorder %s1394_s29, 1 }
  0x38   : > { %s1827_s19 = sshll.u32 %s1390_s28, 5  ;;  %s1828_s21 = sshll.u32 %s1521_s17, 1 }
  0x39   : > { %p1574_p7 = pnand %p1825_p2, %p1824_p1  ;;  %s1583_s20 = scalar_lea.hbm %s1804_s1, %s1827_s19 }
  0x3a   : > { %s305_s18 = scalar_lea.vmem [#allocation5], %s1828_s21  ;;  %s302_s22 = scalar_lea.sflag [#allocation6], %s1521_s17 }
  0x3b   : > { %s1826_s12 = scalar_select %p1574_p7, 1, 0 }
  0x3c   : > { %s313_s0 = sshll.u32 %s305_s18, 4  ;;  %s1246_s30 = scalar_lea.hbm %s1583_s20, 32  ;;  %s314_s0 = int_to_ptr.vmem [resolvable:$true] %s313_s0 }
  0x3d   : > { %p1247_p9 = scmp.ne.s32.totalorder %s1583_s20, %s1246_s30  ;;  %s1251_s19 = scalar_lea.hbm %s1804_s1, 64 }
  0x3e   : > { %p1252_p3 = scmp.lt.u32.totalorder %s1583_s20, %s1804_s1  ;;  %p1253_p6 = scmp.lt.u32.totalorder %s1251_s19, %s1246_s30 }
  0x3f   : > { %p1249_p11 = pnand %p1247_p9, %p1218_p5  ;;  %p1255_p10 = scmp.lt.u32.totalorder %s1246_s30, %s1583_s20 }
  0x40   : > { %p1254_p4 = por %p1253_p6, %p1252_p3 }
  0x41   : > { %p1250_p13 = pneg %p1249_p11 }
  0x42   : > { %p1256_p12 = por %p1255_p10, %p1254_p4 }
  0x44   : > { %p1257_p1 = pnand %p1256_p12, %p1250_p13 }
  0x46   : > { %1260 = shalt.err (!%p1257_p1)
}
  0x47   : > { %s1261_s17 = scalar_lea.vmem %s314_s0, 32  ;;  %s1397_s21 = smov [#allocation5]  }
  0x48   : > { %p1262_p2 = scmp.ne.s32.totalorder %s314_s0, %s1261_s17  ;;  %s1266_s9 = sshll.u32 %s1397_s21, 4  ;;  %s1267_s9 = int_to_ptr.vmem [resolvable:$false] %s1266_s9 }
  0x49   : > { %s1268_s18 = scalar_lea.vmem %s1267_s9, 64  ;;  %p1269_p8 = scmp.lt.s32.totalorder %s314_s0, %s1267_s9 }
  0x4a   : > { %p1264_p9 = pnand %p1262_p2, %p1218_p5  ;;  %p1270_p7 = scmp.lt.s32.totalorder %s1268_s18, %s1261_s17 }
  0x4c   : > { %p1265_p11 = pneg %p1264_p9  ;;  %p1271_p3 = por %p1270_p7, %p1269_p8 }
  0x4e   : > { %p1272_p6 = pnand %p1271_p3, %p1265_p11 }
  0x50   : > { %1275 = shalt.err (!%p1272_p6)
}
  0x51   : > { %1126 = dma.hbm_to_vmem [thread:$0]  (!%p1538_p0), %s1583_s20, 32, %s314_s0, %s302_s22  }
  0x52   : > { %p1829_p13 = scmp.ne.s32.totalorder %s1826_s12, 0 }
  0x53   : > { %s1610_s30 = sand.u32 (!%p1829_p13), 1, %s1378_s25   ;;  %p1830_p8 = scmp.ne.s32.totalorder (!%p1829_p13), %s1819_s13, 0 }
  0x54   : > { %359 = sbr.rel (%p1829_p13) target bundleno = 539 (0x21b), region = 44  ;;  %s1613_s10 = sshll.u32 (!%p1829_p13), %s1610_s30, 1 }
  0x55   : > { %s362_s19 = scalar_lea.sflag (!%p1829_p13), [#allocation3], %s1610_s30  ;;  %s365_s11 = scalar_lea.vmem (!%p1829_p13), [#allocation2], %s1613_s10 }
  0x5b   : > { %1357 = dma.done.wait (%p1830_p8), %s362_s19, 32  }
  0x5c   : > { %1359 = vsyncadd (%p1830_p8), %s362_s19, 4294967264  ;;  %s371_s0 = scalar_lea.sflag [#allocation6], %s1610_s30  ;;  %s374_s8 = scalar_lea.vmem [#allocation5], %s1613_s10 }
  0x5d   : > { %1361 = dma.done.wait (%p1830_p8), %s371_s0, 32  }
  0x5e   : > { %1363 = vsyncadd (%p1830_p8), %s371_s0, 4294967264  ;;  %p439_p0 = scmp.lt.s32.totalorder %s1386_s27, 1  ;;  %v1398_v0 = vmov 7   ;;  %v1638_v2 = vld [vmem:[%s374_s8] sm:$0x3]  ;;  %s1399_s13 = smov 40  }
  0x5f   : > { %1200 = vset.pattern.permute.xlu1 %v1398_v0  ;;  %s1400_s21 = smov 126   ;;  %s1401_s9 = smov 127   ;;  %v1402_v22 = vmov 683565275   ;;  %v1403_v24 = vmov 2475754826  }
  0x60   : > { %s1629_s12 = scalar_select %p439_p0, %s1386_s27, 1  ;;  %757 = vrot.lane.b32.xlu1 %v1638_v2, %s1399_s13  ;;  %v1404_v26 = vmov 2131351028   ;;  %v1405_v28 = vmov 2102212464  }
  0x61   : > { %v1406_v30 = vmov 920167782   ;;  %v1407_v37 = vmov 1326507024   ;;  %s857_s8 = scalar_lea.sflag [#allocation4], %s1610_s30  ;;  %p1831_p7 = scmp.ne.s32.totalorder %s1820_s14, 0 }
  0x62   : > { %s1632_s20 = sshll.u32 %s1629_s12, 1  ;;  %s444_s23 = scalar_lea.vmem %s1805_s2, %s1629_s12 }
  0x63   : > { %s451_s17 = scalar_lea.vmem %s1806_s3, %s1632_s20  ;;  %s459_s0 = scalar_lea.vmem %s1807_s4, %s1632_s20 }
  0x64   : > { %v468_v1 = vld [vmem:[%s451_s17] sm:$0x3]  ;;  %s1413_s12 = smov 89  }
  0x65   : > { %v1094_v3 = vmul.f32 -1.442695, %v468_v1  ;;  %471 = vperm.xlu1 %1200, %v468_v1  }
  0x67   : > { %1208 = vpow2.f32 %v1094_v3 }
  0x71   : > { %v1209_v4 = vpop.eup %1208 }
  0x72   : > { %v488_v5 = vadd.f32 1.0, %v1209_v4 }
  0x74   : > { %1210 = vrcp.f32 %v488_v5  ;;  %v1408_v5 = vmov 0  }
  0x75   : > { %1202 = vset.pattern.permute.xlu1 %v1408_v5 }
  0x7e   : > { %v1642_v6 = vpop.eup %1210 }
  0x7f   : > { %v497_v7 = vmul.f32 1.8849556, %v1642_v6  ;;  %v495_v8 = vmul.f32 1.5707964, %v1642_v6 }
  0x81   : > { %v498_v9 = vadd.f32 -0.9424778, %v497_v7  ;;  %v1646_v10 = vadd.f32 -0.7853982, %v495_v8 }
  0x83   : > { %707 = vrot.lane.b32.xlu0 %v498_v9, %s1400_s21  ;;  %v502_v11 = vand.u32 2139095040, %v1646_v10  ;;  %v499_v13 = vand.u32 2147483647, %v1646_v10  ;;  %vm501_vm7 = vcmp.lt.s32.totalorder %v1646_v10, 0  ;;  %vm591_vm15 = vweird.f32 %v1646_v10 }
  0x85   : > { %v503_v12 = vshrl.u32 %v502_v11, 23  ;;  %v506_v16 = vand.u32 8388607, %v499_v13  ;;  %vm500_vm8 = vcmp.le.f32.partialorder %v499_v13, 0.7853982 }
  0x87   : > { %717 = vrot.lane.b32.xlu0 %v498_v9, %s1401_s9  ;;  %v1095_v14 = vadd.s32 4294967169, %v503_v12  ;;  %v507_v19 = vor.u32 8388608, %v506_v16 }
  0x89   : > { %v509_v15 = vadd.s32 1, %v1095_v14  ;;  %v547_v39 = vshll.u32 %v507_v19, 8 }
  0x8b   : > { %vm510_vm0 = vcmp.gt.s32.totalorder %v509_v15, 0 }
  0x8c   : > { %v511_v17 = vsel %vm510_vm0, %v509_v15, 0  ;;  %vm756_vm0 = vcmask 1047872  }
  0x8d   : > { %v513_v18 = vand.u32 31, %v511_v17  ;;  %v512_v20 = vshrl.u32 %v511_v17, 5 }
  0x8f   : > { %v514_v21 = vsub.s32 32, %v513_v18  ;;  %v516_v23 = vshll.u32 %v1402_v22, %v513_v18  ;;  %v519_v25 = vshll.u32 %v1403_v24, %v513_v18  ;;  %v522_v27 = vshll.u32 %v1404_v26, %v513_v18 }
  0x90   : > { %v525_v29 = vshll.u32 %v1405_v28, %v513_v18  ;;  %v528_v31 = vshll.u32 %v1406_v30, %v513_v18  ;;  %vm531_vm1 = vcmp.lt.s32.totalorder %v512_v20, 1  ;;  %vm534_vm2 = vcmp.lt.s32.totalorder %v512_v20, 4 }
  0x91   : > { %v515_v32 = vshrl.u32 %v1402_v22, %v514_v21  ;;  %v517_v33 = vshrl.u32 %v1403_v24, %v514_v21  ;;  %v520_v34 = vshrl.u32 %v1404_v26, %v514_v21  ;;  %v523_v35 = vshrl.u32 %v1405_v28, %v514_v21 }
  0x92   : > { %v526_v36 = vshrl.u32 %v1406_v30, %v514_v21  ;;  %v529_v38 = vshrl.u32 %v1407_v37, %v514_v21  ;;  %vm532_vm3 = vcmp.lt.s32.totalorder %v512_v20, 2  ;;  %vm533_vm4 = vcmp.lt.s32.totalorder %v512_v20, 3 }
  0x93   : > { %v518_v40 = vor.u32 %v517_v33, %v516_v23  ;;  %v521_v41 = vor.u32 %v520_v34, %v519_v25  ;;  %v524_v42 = vor.u32 %v523_v35, %v522_v27 }
  0x94   : > { %v527_v43 = vor.u32 %v526_v36, %v525_v29  ;;  %v530_v44 = vor.u32 %v529_v38, %v528_v31 }
  0x95   : > { %v535_v45 = vsel %vm531_vm1, %v515_v32, %v518_v40  ;;  %v536_v46 = vsel %vm534_vm2, %v524_v42, 2102212464  ;;  %v539_v47 = vsel %vm531_vm1, %v518_v40, %v521_v41  ;;  %v543_v48 = vsel %vm531_vm1, %v521_v41, %v524_v42 }
  0x96   : > { %v537_v49 = vsel %vm533_vm4, %v521_v41, %v536_v46  ;;  %v540_v50 = vsel %vm534_vm2, %v527_v43, 920167782  ;;  %v544_v51 = vsel %vm534_vm2, %v530_v44, 1326507024  ;;  %v1409_v41 = vmov 2  }
  0x97   : > { %v541_v52 = vsel %vm533_vm4, %v524_v42, %v540_v50  ;;  %v545_v53 = vsel %vm533_vm4, %v527_v43, %v544_v51  ;;  %v538_v54 = vsel %vm532_vm3, %v535_v45, %v537_v49  ;;  %1201 = vset.pattern.permute.xlu0 %v1409_v41  ;;  %vm481_vm1 = vcmask 320512  }
  0x98   : > { %v542_v55 = vsel %vm532_vm3, %v539_v47, %v541_v52  ;;  %v546_v56 = vsel %vm532_vm3, %v543_v48, %v545_v53  ;;  %v554_v61 = vmul.u32 %v547_v39, %v538_v54  ;;  %vm839_vm2 = vcmask 1041408  }
  0x99   : > { %v1654_v57 = vmul.u32.u64.low %v547_v39, %v546_v56  ;;  %v1655_v58 = vmul.u32.u64.high %v547_v39, %v546_v56, %v1654_v57  ;;  %v1657_v59 = vmul.u32.u64.low %v547_v39, %v542_v55  ;;  %v1658_v60 = vmul.u32.u64.high %v547_v39, %v542_v55, %v1657_v59 }
  0x9a   : > { %vm854_vm3 = vcmask 8192  }
  0x9b   : > { %vm556_vm5 = vc.u32 %v1655_v58, %v1657_v59  ;;  %v557_v62 = vadd.s32 1, %v1658_v60  ;;  %v555_v16 = vadd.s32 %v1657_v59, %v1655_v58  ;;  %v741_v59 = vlaneseq }
  0x9d   : > { %v558_v63 = vsel %vm556_vm5, %v557_v62, %v1658_v60  ;;  %v1410_v60 = vmov 1983009808   ;;  %v464_v62 = vld [vmem:[%s365_s11] sm:$0x3] }
  0x9e   : > { %v559_v0 = vadd.s32 %v558_v63, %v554_v61  ;;  %v826_v61 = vunpack.c.l.s4 %v1410_v60  ;;  %v475_v63 = vsub.f32 %v1638_v2, %v464_v62 }
  0xa0   : > { %v560_v1 = vadd.s32 536870912, %v559_v0 }
  0xa2   : > { %v561_v3 = vshrl.u32 %v560_v1, 30  ;;  %v827_v1 = vunpack.c.0.s8 %v826_v61 }
  0xa4   : > { %v562_v4 = vshll.u32 %v561_v3, 30  ;;  %v585_v29 = vsub.s32 4, %v561_v3 }
  0xa6   : > { %v563_v7 = vsub.s32 %v559_v0, %v562_v4  ;;  %v586_v31 = vsel %vm501_vm7, %v585_v29, %v561_v3  ;;  %v1685_v0 = vshrl.u32 %v741_v59, 7  ;;  %v810_v3 = vld [vmem:[%s459_s0] sm:$0x3]  ;;  %v476_v4 = vmul.f32 1000.0, %v475_v63 }
  0xa7   : > { %v588_v32 = vsel %vm500_vm8, 0, %v586_v31  ;;  %v811_v5 = vunpack.c.l.bf16 %v810_v3 }
  0xa8   : > { %v565_v8 = vsub.s32 0, %v563_v7  ;;  %v695_v33 = vadd.s32 3, %v588_v32  ;;  %v592_v37 = vand.u32 3, %v588_v32 }
  0xaa   : > { %v1096_v9 = vmin.u32 %v565_v8, %v563_v7  ;;  %v696_v36 = vand.u32 3, %v695_v33  ;;  %vm594_vm11 = vcmp.eq.s32.totalorder %v592_v37, 0  ;;  %vm597_vm12 = vcmp.eq.s32.totalorder %v592_v37, 2 }
  0xab   : > { %vm593_vm14 = vcmp.lt.s32.totalorder %v592_v37, 2  ;;  %v477_v8 = vmul.f32 %v476_v4, %v476_v4  ;;  %v491_v33 = vmul.f32 0.4, %v1642_v6  ;;  %v493_v37 = vmul.f32 0.8, %v1642_v6 }
  0xac   : > { %v567_v11 = vclz %v1096_v9  ;;  %vm698_vm9 = vcmp.eq.s32.totalorder %v696_v36, 0  ;;  %vm701_vm10 = vcmp.eq.s32.totalorder %v696_v36, 2  ;;  %vm697_vm13 = vcmp.lt.s32.totalorder %v696_v36, 2  ;;  %v466_v9 = vld [vmem:[%s444_s23] sm:$0x1]  ;;  %s1414_s23 = smov [#allocation7]  }
  0xad   : > { %v1412_v36 = vmov 3   ;;  %s1280_s11 = sshll.u32 %s1414_s23, 4  ;;  %s1281_s11 = int_to_ptr.vmem [resolvable:$false] %s1280_s11 }
  0xae   : > { %v1097_v12 = vadd.s32 4294967294, %v567_v11  ;;  %v816_v11 = vsub.s32 0, %v1685_v0  ;;  %s1282_s17 = scalar_lea.vmem %s1281_s11, 32 }
  0xb0   : > { %vm1098_vm6 = vcmp.lt.s32.totalorder %v1097_v12, 0 }
  0xb1   : > { %v570_v14 = vsel %vm1098_vm6, 0, %v1097_v12  ;;  %v820_v12 = vsub.s32 1, %v1685_v0 }
  0xb2   : > { %v575_v15 = vsub.s32 4294967266, %v570_v14  ;;  %v571_v17 = vsub.s32 32, %v570_v14  ;;  %v572_v19 = vshll.u32 %v563_v7, %v570_v14  ;;  %v830_v7 = vsub.s32 %v827_v1, %v1685_v0 }
  0xb4   : > { %v576_v18 = vadd.s32 127, %v575_v15  ;;  %v573_v20 = vshrl.u32 %v555_v16, %v571_v17  ;;  %v831_v14 = vrot.slane %v811_v5, %v830_v7  ;;  %v467_v16 = vunpack.c.l.bf16 %v466_v9 }
  0xb5   : > { %v478_v17 = vmul.f32 0.5, %v477_v8 }
  0xb6   : > { %v577_v21 = vshll.u32 %v576_v18, 23  ;;  %v574_v22 = vor.u32 %v573_v20, %v572_v19 }
  0xb8   : > { %v578_v23 = vor.u32 4788187, %v577_v21  ;;  %v581_v25 = vcvt.s32.f32 %v574_v22  ;;  %v832_v21 = vcombine.high %v831_v14, %v831_v14 }
  0xba   : > { %v579_v24 = vand.u32 2147483647, %v578_v23  ;;  %v479_v23 = vsub.f32 5.9888167, %v478_v17 }
  0xbc   : > { %v582_v26 = vmul.f32 %v581_v25, %v579_v24 }
  0xbe   : > { %v583_v27 = vxor.u32 2147483648, %v582_v26 }
  0xc0   : > { %v584_v28 = vsel %vm501_vm7, %v583_v27, %v582_v26 }
  0xc1   : > { %v587_v30 = vsel %vm500_vm8, %v1646_v10, %v584_v28 }
  0xc2   : > { %1212 = vcosq.f32 %v587_v30 }
  0xc3   : > { %1214 = vsinq.f32 %v587_v30 }
  0xcc   : > { %v1213_v34 = vpop.eup %1212 }
  0xcd   : > { %v1215_v35 = vpop.eup %1214  ;;  %v598_v39 = vxor.u32 2147483648, %v1213_v34 }
  0xce   : > { %v595_v38 = vxor.u32 2147483648, %v1215_v35 }
  0xcf   : > { %v703_v40 = vsel %vm701_vm10, %v598_v39, %v1215_v35  ;;  %v599_v43 = vsel %vm597_vm12, %v598_v39, %v1215_v35  ;;  %v1411_v35 = vmov 1  }
  0xd0   : > { %v700_v13 = vsel %vm698_vm9, %v1213_v34, %v595_v38  ;;  %v596_v42 = vsel %vm594_vm11, %v1213_v34, %v595_v38  ;;  %v492_v34 = vadd.f32 -0.2, %v491_v33  ;;  %v494_v38 = vadd.f32 0.6, %v493_v37 }
  0xd1   : > { %v704_v44 = vsel %vm697_vm13, %v700_v13, %v703_v40  ;;  %v600_v45 = vsel %vm593_vm14, %v596_v42, %v599_v43 }
  0xd2   : > { %v705_v46 = vsel %vm591_vm15, nan, %v704_v44  ;;  %v601_v48 = vsel %vm591_vm15, nan, %v600_v45  ;;  %v758_v57 = vpop.permute.xlu1 %757 }
  0xd3   : > { %v759_v10 = vsel %vm756_vm0, %v758_v57, %v1638_v2 }
  0xe4   : > { %v472_v18 = vpop.permute.xlu1 %471 }
  0xe5   : > { %v474_v22 = vmul.f32 %v472_v18, %v467_v16 }
  0xe7   : > { %v480_v26 = vmul.f32 %v479_v23, %v474_v22 }
  0xe9   : > { %v482_v29 = vsel %vm481_vm1, %v480_v26, 0.0 }
  0xf5   : > { %v708_v47 = vpop.permute.xlu0 %707 }
  0xf6   : > { %v710_v49 = vmul.f32 %v708_v47, %v705_v46  ;;  %v727_v51 = vmul.f32 %v708_v47, %v601_v48 }
  0xf8   : > { %v711_v50 = vsub.f32 %v601_v48, %v710_v49  ;;  %v728_v54 = vadd.f32 %v727_v51, %v705_v46 }
  0xf9   : > { %v718_v52 = vpop.permute.xlu0 %717 }
  0xfa   : > { %v720_v53 = vmul.f32 %v718_v52, %v601_v48  ;;  %713 = vrot.lane.b32.xlu0 %v711_v50, %s1400_s21  ;;  %v734_v56 = vmul.f32 %v718_v52, %v705_v46 }
  0xfc   : > { %v721_v55 = vsub.f32 %v720_v53, %v705_v46  ;;  %v735_v58 = vadd.f32 %v734_v56, %v601_v48  ;;  %v742_v48 = vand.u32 127, %v741_v59 }
  0xfe   : > { %730 = vrot.lane.b32.xlu0 %v728_v54, %s1400_s21  ;;  %723 = vrot.lane.b32.xlu1 %v721_v55, %s1401_s9  ;;  %v851_v52 = vsub.s32 %v742_v48, %v1685_v0  ;;  %s431_s21 = scalar_lea.vmem [#allocation7], %s1610_s30 }
  0xff   : > { %s875_s18 = sshll.u32 %s431_s21, 4  ;;  %s1714_s18 = int_to_ptr.vmem [resolvable:$true] %s875_s18 }
 0x100   : > { %s1276_s22 = scalar_lea.vmem %s1714_s18, 16  ;;  %p1283_p12 = scmp.lt.s32.totalorder %s1714_s18, %s1281_s11 }
 0x101   : > { %p1277_p5 = scmp.ne.s32.totalorder %s1714_s18, %s1276_s22  ;;  %p1284_p1 = scmp.lt.s32.totalorder %s1282_s17, %s1276_s22 }
 0x102   : > { %737 = vrot.lane.b32.xlu1 %v735_v58, %s1401_s9  ;;  %760 = vrot.lane.b32.xlu0 %v759_v10, %s1399_s13  ;;  %s463_s13 = scalar_lea.vmem %s1808_s5, %s1632_s20  ;;  %s1104_s20 = sshll.u32 %s1386_s27, 4 }
 0x103   : > { %v812_v15 = vld [vmem:[%s463_s13] sm:$0x3]  ;;  %s1712_s0 = scalar_lea.hbm %s1809_s6, %s1104_s20  ;;  %p1278_p4 = pnand %p1277_p5, %p1831_p7 }
 0x104   : > { %v817_v19 = vrot.slane %v812_v15, %v816_v11  ;;  %v821_v20 = vrot.slane %v812_v15, %v820_v12  ;;  %p1285_p2 = por %p1284_p1, %p1283_p12 }
 0x105   : > { %p1279_p10 = pneg %p1278_p4 }
 0x106   : > { %v835_v24 = vsub.f32 %v817_v19, %v831_v14  ;;  %v836_v25 = vsub.f32 %v821_v20, %v832_v21 }
 0x107   : > { %p1286_p9 = pnand %p1285_p2, %p1279_p10 }
 0x108   : > { %v837_v27 = vand.u32 2147483647, %v835_v24  ;;  %v838_v28 = vand.u32 2147483647, %v836_v25 }
 0x10a   : > { %v840_v30 = vsel %vm839_vm2, %v837_v27, 0.0  ;;  %v841_v31 = vsel %vm839_vm2, %v838_v28, 0.0 }
 0x10b   : > { %v842_v32 = vadd.f32 %v841_v31, %v840_v30 }
 0x121   : > { %483 = vadd.xlane.f32.xlu0 %v482_v29 }
 0x126   : > { %843 = vadd.xlane.f32.xlu1 %v842_v32 }
 0x137   : > { %786 = vperm.xlu1 %1202, %v492_v34  }
 0x13b   : > { %1203 = vset.pattern.permute.xlu1 %v1411_v35 }
 0x13c   : > { %804 = vperm.xlu1 %1203, %v492_v34  }
 0x140   : > { %1204 = vset.pattern.permute.xlu1 %v1412_v36 }
 0x16c   : > { %v714_v39 = vpop.permute.xlu0 %713 }
 0x16d   : > { %v716_v13 = vmul.f32 %v714_v39, %v494_v38 }
 0x16f   : > { %773 = vperm.xlu0 %1201, %v716_v13  }
 0x170   : > { %v724_v40 = vpop.permute.xlu1 %723  ;;  %v731_v43 = vpop.permute.xlu0 %730 }
 0x171   : > { %v726_v42 = vmul.f32 %v724_v40, %v494_v38  ;;  %v733_v44 = vmul.f32 %v731_v43, %v494_v38 }
 0x173   : > { %779 = vperm.xlu1 %1204, %v726_v42   ;;  %1207 = vset.pattern.permute.xlu0 %v1411_v35 }
 0x174   : > { %v738_v45 = vpop.permute.xlu1 %737  ;;  %v761_v47 = vpop.permute.xlu0 %760 }
 0x175   : > { %v740_v46 = vmul.f32 %v738_v45, %v494_v38  ;;  %v762_v6 = vsel %vm756_vm0, %v761_v47, %v1638_v2 }
 0x177   : > { %1205 = vset.pattern.permute.xlu1 %v1409_v41 }
 0x178   : > { %792 = vperm.xlu1 %1205, %v733_v44  }
 0x17c   : > { %1206 = vset.pattern.permute.xlu1 %v1412_v36 }
 0x17d   : > { %798 = vperm.xlu1 %1206, %v740_v46  }
 0x181   : > { %764 = vrot.lane.b32.xlu1 %v762_v6, %s1401_s9 }
 0x185   : > { %767 = vrot.lane.b32.xlu1 %v762_v6, %s1413_s12 }
 0x1ae   : > { %v484_v50 = vpop.xlane.xlu0 %483 }
 0x1b3   : > { %v844_v49 = vpop.xlane.xlu1 %843 }
 0x1b4   : > { %v845_v41 = vmul.f32 5.0, %v844_v49 }
 0x1b6   : > { %v846_v51 = vsub.f32 234.57043, %v845_v41 }
 0x1b8   : > { %v847_v53 = vadd.f32 %v846_v51, %v484_v50 }
 0x1ba   : > { %v852_v54 = vrot.slane %v847_v53, %v851_v52 }
 0x1bc   : > { %855 = vst.msk [vmem:[%s431_s21] sm:$0x1] %vm854_vm3, %v852_v54 }
 0x1bd   : > { %1289 = shalt.err (!%p1286_p9)
}
 0x1be   : > { %s1290_s13 = scalar_lea.hbm %s1712_s0, 16  ;;  %s1294_s21 = scalar_lea.hbm %s1809_s6, 32 }
 0x1bf   : > { %p1291_p11 = scmp.ne.s32.totalorder %s1712_s0, %s1290_s13  ;;  %p1295_p13 = scmp.lt.u32.totalorder %s1712_s0, %s1809_s6 }
 0x1c0   : > { %p1296_p8 = scmp.lt.u32.totalorder %s1294_s21, %s1290_s13  ;;  %p1298_p5 = scmp.lt.u32.totalorder %s1290_s13, %s1712_s0 }
 0x1c1   : > { %p1292_p3 = pnand %p1291_p11, %p1831_p7 }
 0x1c2   : > { %p1297_p0 = por %p1296_p8, %p1295_p13 }
 0x1c3   : > { %p1293_p6 = pneg %p1292_p3 }
 0x1c4   : > { %p1299_p4 = por %p1298_p5, %p1297_p0 }
 0x1c6   : > { %p1300_p10 = pnand %p1299_p4, %p1293_p6 }
 0x1c8   : > { %1303 = shalt.err (!%p1300_p10)
}
 0x1c9   : > { %1116 = dma.vmem_to_hbm [thread:$0]  (%p1831_p7), %s1714_s18, 16, %s1712_s0, %s857_s8   ;;  %v787_v55 = vpop.permute.xlu1 %786  ;;  %v747_v59 = vand.u32 1, %v742_v48 }
 0x1ca   : > { %s1105_s18 = sshll.u32 %s1386_s27, 5  ;;  %s438_s0 = scalar_lea.vmem [#allocation8], %s1613_s10 }
 0x1cb   : > { %vm1738_vm4 = vcmp.eq.s32.totalorder %v747_v59, 0  ;;  %s889_s8 = sshll.u32 %s438_s0, 4  ;;  %s1751_s11 = scalar_lea.hbm %s1810_s7, %s1105_s18  ;;  %s1753_s8 = int_to_ptr.vmem [resolvable:$true] %s889_s8 }
 0x1cc   : > { %s861_s27 = scalar_lea.sflag [#allocation9], %s1610_s30  ;;  %s1304_s10 = scalar_lea.vmem %s1753_s8, 32 }
 0x1cd   : > { %v805_v56 = vpop.permute.xlu1 %804  ;;  %p1305_p12 = scmp.ne.s32.totalorder %s1753_s8, %s1304_s10  ;;  %s1415_s17 = smov [#allocation8]  }
 0x1ce   : > { %s1308_s13 = sshll.u32 %s1415_s17, 4  ;;  %s1309_s13 = int_to_ptr.vmem [resolvable:$false] %s1308_s13 }
 0x1cf   : > { %p1306_p1 = pnand %p1305_p12, %p1831_p7  ;;  %s1310_s12 = scalar_lea.vmem %s1309_s13, 64 }
 0x1d0   : > { %p1311_p9 = scmp.lt.s32.totalorder %s1753_s8, %s1309_s13  ;;  %p1312_p11 = scmp.lt.s32.totalorder %s1310_s12, %s1304_s10 }
 0x1d1   : > { %p1307_p2 = pneg %p1306_p1 }
 0x1d2   : > { %p1313_p3 = por %p1312_p11, %p1311_p9 }
 0x1d4   : > { %p1314_p6 = pnand %p1313_p3, %p1307_p2 }
 0x1ee   : > { %v774_v62 = vpop.permute.xlu0 %773 }
 0x1ef   : > { %v776_v1 = vmul.f32 %v774_v62, %v1638_v2 }
 0x1f2   : > { %v780_v57 = vpop.permute.xlu1 %779 }
 0x1f7   : > { %v793_v10 = vpop.permute.xlu1 %792 }
 0x1fc   : > { %v799_v58 = vpop.permute.xlu1 %798 }
 0x1fd   : > { %v801_v3 = vmul.f32 %v799_v58, %v1638_v2 }
 0x200   : > { %v765_v60 = vpop.permute.xlu1 %764 }
 0x204   : > { %v768_v63 = vpop.permute.xlu1 %767 }
 0x205   : > { %v770_v0 = vsel %vm1738_vm4, %v765_v60, %v768_v63 }
 0x206   : > { %v782_v4 = vmul.f32 %v780_v57, %v770_v0  ;;  %v795_v5 = vmul.f32 %v793_v10, %v770_v0 }
 0x208   : > { %v783_v7 = vadd.f32 %v782_v4, %v776_v1  ;;  %v802_v8 = vadd.f32 %v801_v3, %v795_v5 }
 0x20a   : > { %v789_v9 = vadd.f32 %v787_v55, %v783_v7  ;;  %v807_v11 = vadd.f32 %v805_v56, %v802_v8 }
 0x20c   : > { %v808_v2 = vsel %vm1738_vm4, %v789_v9, %v807_v11 }
 0x20d   : > { %809 = vst.msk [vmem:[%s438_s0] sm:$0x3] %vm481_vm1, %v808_v2 }
 0x20e   : > { %1317 = shalt.err (!%p1314_p6)
}
 0x20f   : > { %s1318_s30 = scalar_lea.hbm %s1751_s11, 32  ;;  %s1322_s19 = scalar_lea.hbm %s1810_s7, 64 }
 0x210   : > { %p1319_p13 = scmp.ne.s32.totalorder %s1751_s11, %s1318_s30  ;;  %p1323_p5 = scmp.lt.u32.totalorder %s1751_s11, %s1810_s7 }
 0x211   : > { %p1324_p4 = scmp.lt.u32.totalorder %s1322_s19, %s1318_s30  ;;  %p1326_p12 = scmp.lt.u32.totalorder %s1318_s30, %s1751_s11 }
 0x212   : > { %p1320_p8 = pnand %p1319_p13, %p1831_p7 }
 0x213   : > { %p1325_p10 = por %p1324_p4, %p1323_p5 }
 0x214   : > { %p1321_p0 = pneg %p1320_p8 }
 0x215   : > { %p1327_p1 = por %p1326_p12, %p1325_p10 }
 0x217   : > { %p1328_p2 = pnand %p1327_p1, %p1321_p0 }
 0x219   : > { %1331 = shalt.err (!%p1328_p2)
}
 0x21a   : > { %1117 = dma.vmem_to_hbm [thread:$0]  (%p1831_p7), %s1753_s8, 32, %s1751_s11, %s861_s27  }
 0x21b PF: > { %s901_s0 = sand.u32 1, %s1374_s24   ;;  %p1834_p9 = scmp.ne.s32.totalorder %s1821_s16, 0 }
 0x21c   : > { %p1835_p11 = scmp.ge.s32.totalorder %s1394_s29, 2  ;;  %s902_s22 = scalar_lea.sflag [#allocation4], %s901_s0 }
 0x21e   : > { %p1128_p3 = pnand %p1835_p11, %p1834_p9 }
 0x220   : > { %1365 = dma.done.wait (!%p1128_p3), %s902_s22, 16  }
 0x221   : > { %1367 = vsyncadd (!%p1128_p3), %s902_s22, 4294967280  ;;  %s910_s23 = scalar_lea.sflag [#allocation9], %s901_s0 }
 0x222   : > { %1369 = dma.done.wait (!%p1128_p3), %s910_s23, 32  }
 0x223   : > { %1371 = vsyncadd (!%p1128_p3), %s910_s23, 4294967264  ;;  %s30_s29 = sadd.s32 1, %s1394_s29   ;;  %s1836_s14 = sld [smem:[#allocation14_spill]] }
 0x224   : > { %p27_p6 = scmp.ge.s32.totalorder %s30_s29, 4   ;;  %s1837_s24 = smov %s1378_s25 }
 0x225   : > { %s1838_s25 = smov %s1382_s26  ;;  %s1839_s26 = smov %s1512_s15 }
 0x226   : > { %s1840_s27 = smov %s1390_s28  ;;  %29 = sbr.rel (!%p27_p6) target bundleno = 12 (0xc), region = 131 }
 0x229   : > { %s1841_s28 = smov %s1836_s14 }
 0x22d   :  { %915 = vsyncpa [#allocation3], 1 }
 0x22e   :  { %917 = vsyncpa [#allocation3 + $0x1], 1 }
 0x22f   :  { %918 = vsyncpa [#allocation6], 1 }
 0x230   :  { %920 = vsyncpa [#allocation6 + $0x1], 1 }
 0x231   :  { %921 = vsyncpa [#allocation4], 1 }
 0x232   :  { %923 = vsyncpa [#allocation4 + $0x1], 1 }
 0x233   :  { %924 = vsyncpa [#allocation9], 1 }
 0x234   :  { %926 = vsyncpa [#allocation9 + $0x1], 1 }

</bundles_post_ra>
